<compile_context>
chip_gen: v5e
topology: v5e:2x2
jax: 0.10.0
libtpu: 0.0.40
codegen_flags: <defaults>
</compile_context>

<pallas_src>
import jax
import jax.numpy as jnp
from jax import lax
from jax.experimental import pallas as pl
from jax.experimental.pallas import tpu as pltpu


def _round_up(x, m):
    return (x + m - 1) // m * m


def _mlp_kernel(x_ref, w0t_ref, b0_ref, wot_ref, bo_ref, o_ref):
    # x_ref  : [TILE_B, D_in]
    # w0t_ref: [Hs, D_in]   (transposed W0, hidden padded 10 -> 16 on sublanes)
    # b0_ref : [Hs, 1]
    # wot_ref: [1, Hs]      (transposed output weight)
    # bo_ref : [1, 1]
    # o_ref  : [1, TILE_B]  (lane-dense output slab)
    #
    # h^T[j, b] = tanh(sum_i W0^T[j, i] * x[b, i] + b0[j])      -> [Hs, TILE_B]
    ht = lax.dot_general(
        w0t_ref[...], x_ref[...],
        dimension_numbers=(((1,), (1,)), ((), ())),
        preferred_element_type=jnp.float32,
    )
    ht = jnp.tanh(ht + b0_ref[...])
    # z[0, b] = sum_j w_out[j] * h^T[j, b] + b_out               -> [1, TILE_B]
    z = jnp.dot(wot_ref[...], ht, preferred_element_type=jnp.float32) + bo_ref[...]
    o_ref[...] = jax.nn.sigmoid(z)


def _choose_tile_b(batch, d_in, x_slab_bytes=8 << 20):
    """Largest batch tile whose lane-padded f32 x slab stays within the budget.

    Double-buffered x therefore uses <= 2 * x_slab_bytes = 16 MiB; with the
    (tiny) resident weights and the output slab this fits every generation's
    scoped VMEM once vmem_limit_bytes is raised to 40 MiB (v7x-safe).
    """
    d_lane = _round_up(max(d_in, 1), 128)        # VMEM lane-pads the last dim
    per_row_bytes = 4 * d_lane                   # f32 row footprint
    cap = max(128, (x_slab_bytes // per_row_bytes) // 128 * 128)
    b8 = _round_up(batch, 8)
    tile = min(b8, cap)
    # Keep >= 2 grid steps on non-trivial batches so v7x megacore sharding
    # ("parallel" batch axis) has work for both TensorCores.
    if tile == b8 and b8 >= 2048:
        tile = _round_up(pl.cdiv(b8, 2), 128)
    return tile


@jax.jit
def single_class_classifier_forward(x, w0, b0, w_out, b_out):
    """sigmoid(tanh(x @ w0 + b0) @ w_out + b_out) -> [B, 1] float32.

    x:     [B, D_in]
    w0:    [D_in, 10]  (dense0.weight^T)     b0:    [10] or [1, 10]
    w_out: [10, 1]     (output.weight^T)     b_out: [1, 1] / [1] / scalar
    """
    batch, d_in = x.shape
    hidden = w0.shape[1]
    hs = _round_up(max(hidden, 1), 8)            # sublane-pad hidden (10 -> 16)

    if x.dtype != jnp.float32:
        x = x.astype(jnp.float32)                # no-op for f32 inputs (no copy)

    # Tiny parameter tensors: transpose / zero-pad in the wrapper (negligible).
    w0t = jnp.pad(jnp.transpose(w0).astype(jnp.float32), ((0, hs - hidden), (0, 0)))
    b0c = jnp.pad(b0.astype(jnp.float32).reshape(-1), (0, hs - hidden)).reshape(hs, 1)
    wot = jnp.pad(w_out.astype(jnp.float32).reshape(-1), (0, hs - hidden)).reshape(1, hs)
    bo = b_out.astype(jnp.float32).reshape(1, 1)

    tile_b = _choose_tile_b(batch, d_in)
    num_tiles = pl.cdiv(batch, tile_b)           # ragged last tile, no x pad copy

    cost = pl.CostEstimate(                      # real hidden size, incl. output bytes
        flops=2 * batch * hidden * (d_in + 1),
        transcendentals=batch * (hidden + 1),
        bytes_accessed=4 * (batch * d_in + batch + hidden * (d_in + 2) + 1),
    )

    out = pl.pallas_call(
        _mlp_kernel,
        out_shape=jax.ShapeDtypeStruct((1, num_tiles * tile_b), jnp.float32),
        grid_spec=pltpu.PrefetchScalarGridSpec(
            num_scalar_prefetch=0,
            grid=(num_tiles,),
            in_specs=[
                pl.BlockSpec((tile_b, d_in), lambda i: (i, 0)),   # x: streamed tiles
                pl.BlockSpec((hs, d_in), lambda i: (0, 0)),       # W0^T: resident
                pl.BlockSpec((hs, 1), lambda i: (0, 0)),          # b0: resident
                pl.BlockSpec((1, hs), lambda i: (0, 0)),          # w_out^T: resident
                pl.BlockSpec((1, 1), lambda i: (0, 0)),           # b_out: resident
            ],
            out_specs=pl.BlockSpec((1, tile_b), lambda i: (0, i)),  # lane-dense slab
        ),
        compiler_params=pltpu.CompilerParams(
            dimension_semantics=("parallel",),
            vmem_limit_bytes=40 << 20,
        ),
        cost_estimate=cost,
    )(x, w0t, b0c, wot, bo)

    return out[0, :batch].reshape(batch, 1)


def init_params(key, input_dim, hidden=10):
    """Deterministic init mimicking PyTorch nn.Linear default (uniform +-1/sqrt(fan_in))."""
    k0, k1, k2, k3 = jax.random.split(key, 4)
    bound0 = 1.0 / jnp.sqrt(jnp.float32(input_dim))
    w0 = jax.random.uniform(k0, (input_dim, hidden), jnp.float32, -bound0, bound0)
    b0 = jax.random.uniform(k1, (1, hidden), jnp.float32, -bound0, bound0)
    bound1 = 1.0 / jnp.sqrt(jnp.float32(hidden))
    w_out = jax.random.uniform(k2, (hidden, 1), jnp.float32, -bound1, bound1)
    b_out = jax.random.uniform(k3, (1, 1), jnp.float32, -bound1, bound1)
    return w0, b0, w_out, b_out


if __name__ == "__main__":
    key = jax.random.PRNGKey(0)
    k_x, k_p, k_x2 = jax.random.split(key, 3)

    batch = 8
    input_dim = 32
    # num_units=16 would only size the unused dense1 layer; not needed for forward.

    x = jax.random.normal(k_x, (batch, input_dim), jnp.float32)
    w0, b0, w_out, b_out = init_params(k_p, input_dim)

    # Small case (single tile).
    out = jax.block_until_ready(single_class_classifier_forward(x, w0, b0, w_out, b_out))
    ref = jax.nn.sigmoid(jnp.tanh(x @ w0 + b0) @ w_out + b_out)
    assert out.shape == (batch, 1)
    assert jnp.allclose(out, ref, atol=1e-5), "mismatch vs reference (small)"

    # Larger case: multi-tile grid + ragged (unpadded) last tile.
    big_b = 2056
    xb = jax.random.normal(k_x2, (big_b, input_dim), jnp.float32)
    outb = jax.block_until_ready(single_class_classifier_forward(xb, w0, b0, w_out, b_out))
    refb = jax.nn.sigmoid(jnp.tanh(xb @ w0 + b0) @ w_out + b_out)
    assert outb.shape == (big_b, 1)
    assert jnp.allclose(outb, refb, atol=1e-5), "mismatch vs reference (tiled/ragged)"

    print("KERNEL_OK")
</pallas_src>

<mosaic_0001>
module attributes {stable_mosaic.version = 11 : i64} {
  func.func @_mlp_kernel(%arg0: i32, %arg1: memref<8x32xf32, #tpu.memory_space<vmem>>, %arg2: memref<16x32xf32, #tpu.memory_space<vmem>>, %arg3: memref<16x1xf32, #tpu.memory_space<vmem>>, %arg4: memref<1x16xf32, #tpu.memory_space<vmem>>, %arg5: memref<1x1xf32, #tpu.memory_space<vmem>>, %arg6: memref<1x8xf32, #tpu.memory_space<vmem>>) attributes {dimension_semantics = [#tpu.dimension_semantics<parallel>], iteration_bounds = array<i64: 1>, scalar_prefetch = 0 : i64, scratch_operands = 0 : i64, tpu.core_type = #tpu.core_type<tc>, window_params = [{transform_indices = @transform_0, window_bounds = array<i64: 8, 32>}, {pipeline_mode = #tpu.pipeline_mode<synchronous>, transform_indices = @transform_1, window_bounds = array<i64: 16, 32>}, {pipeline_mode = #tpu.pipeline_mode<synchronous>, transform_indices = @transform_2, window_bounds = array<i64: 16, 1>}, {pipeline_mode = #tpu.pipeline_mode<synchronous>, transform_indices = @transform_3, window_bounds = array<i64: 1, 16>}, {pipeline_mode = #tpu.pipeline_mode<synchronous>, transform_indices = @transform_4, window_bounds = array<i64: 1, 1>}, {transform_indices = @transform_5, window_bounds = array<i64: 1, 8>}]} {
    %c0 = arith.constant 0 : index
    %c0_0 = arith.constant 0 : index
    %0 = vector.load %arg2[%c0, %c0_0] : memref<16x32xf32, #tpu.memory_space<vmem>>, vector<16x32xf32>
    %c0_1 = arith.constant 0 : index
    %c0_2 = arith.constant 0 : index
    %1 = vector.load %arg1[%c0_1, %c0_2] : memref<8x32xf32, #tpu.memory_space<vmem>>, vector<8x32xf32>
    %cst = arith.constant dense<0.000000e+00> : vector<16x8xf32>
    %2 = tpu.matmul %0, %1, %cst {dimension_numbers = #tpu.dot_dimension_numbers<[1], [1], [0], [0], [0, 0, 1, 0], [], []>} : vector<16x32xf32>, vector<8x32xf32>, vector<16x8xf32> -> vector<16x8xf32>
    %c0_3 = arith.constant 0 : index
    %c0_4 = arith.constant 0 : index
    %3 = vector.load %arg3[%c0_3, %c0_4] : memref<16x1xf32, #tpu.memory_space<vmem>>, vector<16x1xf32>
    %4 = vector.broadcast %3 : vector<16x1xf32> to vector<16x8xf32>
    %5 = arith.addf %2, %4 : vector<16x8xf32>
    %6 = math.tanh %5 : vector<16x8xf32>
    %c0_5 = arith.constant 0 : index
    %c0_6 = arith.constant 0 : index
    %7 = vector.load %arg4[%c0_5, %c0_6] : memref<1x16xf32, #tpu.memory_space<vmem>>, vector<1x16xf32>
    %cst_7 = arith.constant dense<0.000000e+00> : vector<1x8xf32>
    %8 = tpu.matmul %7, %6, %cst_7 {dimension_numbers = #tpu.dot_dimension_numbers<[1], [0], [0], [1], [0, 0, 1, 1], [], []>} : vector<1x16xf32>, vector<16x8xf32>, vector<1x8xf32> -> vector<1x8xf32>
    %c0_8 = arith.constant 0 : index
    %c0_9 = arith.constant 0 : index
    %9 = vector.load %arg5[%c0_8, %c0_9] : memref<1x1xf32, #tpu.memory_space<vmem>>, vector<1x1xf32>
    %10 = vector.broadcast %9 : vector<1x1xf32> to vector<1x8xf32>
    %11 = arith.addf %8, %10 : vector<1x8xf32>
    %12 = arith.negf %11 : vector<1x8xf32>
    %13 = math.exp %12 : vector<1x8xf32>
    %cst_10 = arith.constant 1.000000e+00 : f32
    %14 = vector.broadcast %cst_10 : f32 to vector<1x8xf32>
    %15 = arith.addf %14, %13 : vector<1x8xf32>
    %16 = arith.divf %14, %15 : vector<1x8xf32>
    %c0_11 = arith.constant 0 : index
    %c0_12 = arith.constant 0 : index
    %17 = vector.load %arg6[%c0_11, %c0_12] : memref<1x8xf32, #tpu.memory_space<vmem>>, vector<1x8xf32>
    tpu.vector_store %arg6[%c0_11, %c0_12], %16 {strides = array<i32>} : memref<1x8xf32, #tpu.memory_space<vmem>>, vector<1x8xf32>,
    return
  }
  func.func @transform_0(%arg0: i32) -> (i32, i32) {
    %c0_i32 = arith.constant 0 : i32
    %c0_i32_0 = arith.constant 0 : i32
    return %arg0, %c0_i32 : i32, i32
  }
  func.func @transform_1(%arg0: i32) -> (i32, i32) {
    %c0_i32 = arith.constant 0 : i32
    %c0_i32_0 = arith.constant 0 : i32
    %c0_i32_1 = arith.constant 0 : i32
    return %c0_i32, %c0_i32_0 : i32, i32
  }
  func.func @transform_2(%arg0: i32) -> (i32, i32) {
    %c0_i32 = arith.constant 0 : i32
    %c0_i32_0 = arith.constant 0 : i32
    %c0_i32_1 = arith.constant 0 : i32
    return %c0_i32, %c0_i32_0 : i32, i32
  }
  func.func @transform_3(%arg0: i32) -> (i32, i32) {
    %c0_i32 = arith.constant 0 : i32
    %c0_i32_0 = arith.constant 0 : i32
    %c0_i32_1 = arith.constant 0 : i32
    return %c0_i32, %c0_i32_0 : i32, i32
  }
  func.func @transform_4(%arg0: i32) -> (i32, i32) {
    %c0_i32 = arith.constant 0 : i32
    %c0_i32_0 = arith.constant 0 : i32
    %c0_i32_1 = arith.constant 0 : i32
    return %c0_i32, %c0_i32_0 : i32, i32
  }
  func.func @transform_5(%arg0: i32) -> (i32, i32) {
    %c0_i32 = arith.constant 0 : i32
    %c0_i32_0 = arith.constant 0 : i32
    return %c0_i32, %arg0 : i32, i32
  }
}

</mosaic_0001>

<bundles_post_ra>
// kernel: single_class_classifier_forward.1
= control target key start
LH: loop header
LB: loop body
LE: loop exit
PB: predicated region body
PF: predicated region fallthrough
CT: control target
= control target key end

     0   :  { %s242_s0 = inlined_call_operand.vmem [shape: f32[8,32], index: 0, kind: input, shape index: {}]   ;;  %s243_s1 = inlined_call_operand.vmem [shape: f32[16,32], index: 1, kind: input, shape index: {}]   ;;  %s244_s2 = inlined_call_operand.vmem [shape: f32[16,1], index: 2, kind: input, shape index: {}]   ;;  %s245_s3 = inlined_call_operand.vmem [shape: f32[1,16], index: 3, kind: input, shape index: {}]   ;;  %s246_s4 = inlined_call_operand.<no memory space> [shape: f32[1,1], index: 4, kind: input, shape index: {}]   ;;  %s247_s5 = inlined_call_operand.hbm [shape: f32[1,8], index: 5, kind: output, shape index: {}]  }
   0x1   :  { %v10_v0 = vstv %s246_s4 }
   0x2   :  { %11 = vst [vmem:[#allocation2] sm:$0x1] %v10_v0 }
   0x3   :  { %v25_v1 = vld [vmem:[%s242_s0] sm:$0xff]  ;;  %vm38_vm0 = vcmask 261120   ;;  %v24_v3 = vld [vmem:[%s243_s1 + $0x8] sm:$0xff] }
   0x4   :  { %v23_v2 = vld [vmem:[%s243_s1] sm:$0xff]  ;;  %142 = vmatpush.xpose.msk.msra.mxu0 %vm38_vm0, %v25_v1  ;;  %147 = vmatpush.xpose.msk.msra.mxu2 %vm38_vm0, %v25_v1  ;;  %v27_v4 = vld [vmem:[%s244_s2 + $0x8] sm:$0xff] }
   0x5   :  { %12 = vsyncpa [#allocation4], 0  ;;  %v186_v5 = vmov 0   ;;  %v26_v6 = vld [vmem:[%s244_s2] sm:$0xff]  ;;  %vm81_vm1 = vcmask 130048   ;;  %s187_s2 = smov [#allocation3]  }
   0x6   :  { %150 = vset.pattern.permute.xlu0 %v186_v5  ;;  %151 = vset.pattern.permute.xlu1 %v186_v5  ;;  %v73_v15 = vld [vmem:[%s245_s3] sm:$0x1]  ;;  %s131_s3 = sshll.u32 %s187_s2, 4  ;;  %s133_s6 = sshll.u32 %s247_s5, 4  ;;  %vm124_vm5 = vcmask 57344   ;;  %s132_s3 = int_to_ptr.vmem [resolvable:$true] %s131_s3  ;;  %s134_s6 = int_to_ptr.hbm [resolvable:$true] %s133_s6 }
   0x7   :  { %35 = vperm.xlu0 %150, %v27_v4   ;;  %143 = vmatmul.msk.f32.vlgmr.msra.gmra.mxu0 %vm38_vm0, %v23_v2 }
   0x8   :  { %144 = vmatmul.msk.f32.vlgmr.msra.gmra.mxu2 %vm38_vm0, %v24_v3 }
   0x9   :  { %v74_v7 = vld [vmem:[#allocation2] sm:$0x1] }
   0xa   :  { %77 = vperm.xlu1 %151, %v74_v7  }
   0xf   :  { %30 = vperm.xlu0 %150, %v26_v6  }
  0x79   :  { %v36_v8 = vpop.permute.xlu0 %35 }
  0x7c   :  { %v78_v17 = vpop.permute.xlu1 %77 }
  0x7d   :  { %v80_v18 = vperm.slane %v78_v17, 0 }
  0x81   :  { %v31_v9 = vpop.permute.xlu0 %30 }
  0x84   :  { %v65_v10 = vpop.f32.mrf.mxu0 }
  0x85   :  { %v66_v12 = vadd.f32 %v65_v10, %v31_v9 }
  0x8b   :  { %v68_v11 = vpop.f32.mrf.mxu2 }
  0x8c   :  { %v69_v13 = vadd.f32 %v68_v11, %v36_v8 }
  0x8e   :  { %152 = vtanh.f32 %v69_v13 }
  0x8f   :  { %154 = vtanh.f32 %v66_v12 }
  0x94   :  { %v153_v14 = vpop.eup %152 }
  0x95   :  { %99 = vmatpush.msra.mxu1 %v153_v14  ;;  %v155_v16 = vpop.eup %154 }
  0x97   :  { %100 = vmatpush.msra.mxu1 %v155_v16 }
  0x98   :  { %145 = vmatmul.msk.f32.vlgmr.msra.gmra.mxu1 %vm81_vm1, %v73_v15 }
 0x115   :  { %v102_v19 = vpop.f32.mrf.mxu1 }
 0x116   :  { %v103_v20 = vadd.f32 %v102_v19, %v80_v18 }
 0x118   :  { %v146_v21 = vmul.f32 -1.442695, %v103_v20 }
 0x11a   :  { %156 = vpow2.f32 %v146_v21 }
 0x120   :  { %v157_v22 = vpop.eup %156 }
 0x121   :  { %v108_v23 = vadd.f32 1.0, %v157_v22 }
 0x123   :  { %158 = vrcp.f32 %v108_v23  ;;  %v120_v27 = vand.u32 2147483648, %v108_v23  ;;  %v118_v29 = vand.u32 2147483647, %v108_v23  ;;  %vm114_vm3 = vweird.f32 %v108_v23 }
 0x125   :  { %v121_v31 = vor.u32 1.1754944e-38, %v120_v27  ;;  %vm119_vm6 = vcmp.eq.f32.partialorder %v118_v29, 8.507059e+37 }
 0x129   :  { %v159_v24 = vpop.eup %158 }
 0x12a   :  { %v110_v25 = vmul.f32 %v159_v24, %v108_v23  ;;  %vm115_vm2 = vweird.f32 %v159_v24 }
 0x12b   :  { %vm116_vm4 = vmor %vm114_vm3, %vm115_vm2 }
 0x12c   :  { %v111_v26 = vsub.f32 1.0, %v110_v25 }
 0x12e   :  { %v112_v28 = vmul.f32 %v159_v24, %v111_v26 }
 0x130   :  { %v113_v30 = vadd.f32 %v159_v24, %v112_v28 }
 0x132   :  { %v117_v32 = vsel %vm116_vm4, %v159_v24, %v113_v30 }
 0x133   :  { %v122_v33 = vsel %vm119_vm6, %v121_v31, %v117_v32 }
 0x134   :  { %125 = vst.msk [vmem:[#allocation3] sm:$0x1] %vm124_vm5, %v122_v33 }
 0x135   :  { %136 = dma.vmem_to_hbm [thread:$0]  %s132_s3, 16, %s134_s6, [#allocation4]  }
 0x136   :  { %184 = dma.done.wait [#allocation4], 16  }
 0x137   :  { %185 = vsyncadd [#allocation4], 4294967280 }
 0x138   :  { %141 = vsyncpa [#allocation4], 1 }

</bundles_post_ra>
